<compile_context>
chip_gen: v6e
topology: v6e:2x2x1
jax: 0.10.0
libtpu: 0.0.40
codegen_flags: <defaults>
</compile_context>

<pallas_src>
import jax
import jax.numpy as jnp
from jax import lax
from jax.experimental import pallas as pl
from jax.experimental.pallas import tpu as pltpu

EPS = 1e-5


def _make_resnet_block_kernel(H, W, C, act_dtype):
    HW = H * W

    def _shift_x(img, col0, colL):
        # Width +-1 shifts with ReflectionPad2d(1) semantics via lane rolls of the
        # flattened HW axis + a single border fix-up select each.
        r_left = pltpu.roll(img, 1, 1)        # value at flat f-1  == (y, x-1)
        r_right = pltpu.roll(img, HW - 1, 1)  # value at flat f+1  == (y, x+1)
        return (
            jnp.where(col0, r_right, r_left),   # dx = 0 -> x-1 (reflect at x == 0)
            img,                                # dx = 1 -> x
            jnp.where(colL, r_left, r_right),   # dx = 2 -> x+1 (reflect at x == W-1)
        )

    def _shift_y(img, row0, rowL):
        # Height +-1 shifts: roll the flattened axis by +-W, fix up first/last rows.
        r_up = pltpu.roll(img, W, 1)          # value at flat f-W  == (y-1, x)
        r_dn = pltpu.roll(img, HW - W, 1)     # value at flat f+W  == (y+1, x)
        return (
            jnp.where(row0, r_dn, r_up),        # dy = 0 -> y-1 (reflect at y == 0)
            img,                                # dy = 1 -> y
            jnp.where(rowL, r_up, r_dn),        # dy = 2 -> y+1 (reflect at y == H-1)
        )

    def _conv3x3_instnorm(img, w_ref, masks):
        # img: (C, HW) activation dtype.  w_ref: (3, 3, Cout, Cin).
        # Returns the instance-normalized conv output, (Cout, HW), f32.
        # Bias intentionally omitted: it cancels under mean subtraction.
        col0, colL, row0, rowL = masks
        tx = _shift_x(img, col0, colL)
        acc = jnp.zeros((C, HW), jnp.float32)
        for dx in range(3):
            ty = _shift_y(tx[dx], row0, rowL)
            for dy in range(3):
                acc = acc + jnp.dot(w_ref[dy, dx], ty[dy],
                                    preferred_element_type=jnp.float32)
        inv_n = 1.0 / HW
        mean = jnp.sum(acc, axis=1, keepdims=True) * inv_n
        cen = acc - mean                      # two-pass variance: better numerics
        var = jnp.sum(cen * cen, axis=1, keepdims=True) * inv_n
        return cen * lax.rsqrt(var + EPS)

    def kernel(x_ref, col_ref, row_ref, w1_ref, w2_ref, o_ref):
        # x_ref / o_ref : (1, C, HW) channel-major, lane-dense blocks.
        # col_ref/row_ref: (1, HW) int32 pixel coordinates (built in the wrapper).
        # w*_ref        : (3, 3, Cout, Cin) weight slabs.
        col = jnp.broadcast_to(col_ref[...], (C, HW))
        row = jnp.broadcast_to(row_ref[...], (C, HW))
        masks = (col == 0, col == W - 1, row == 0, row == H - 1)

        x_chw = x_ref[0]                                             # (C, HW)
        h = jnp.maximum(_conv3x3_instnorm(x_chw, w1_ref, masks), 0.0)
        # Cast h back to the activation dtype -> bf16 MXU path for conv2.
        y = _conv3x3_instnorm(h.astype(act_dtype), w2_ref, masks)    # (C, HW) f32
        o_ref[0] = (x_chw.astype(jnp.float32) + y).astype(o_ref.dtype)

    return kernel


def resnet_block(x_nchw, w1, b1, w2, b2):
    """x_nchw: (N, C, H, W). w*: (3, 3, Cin, Cout) HWIO. b*: (C,) (unused: a
    per-channel bias cancels exactly under InstanceNorm2d(affine=False)).
    Returns (N, C, H, W)."""
    del b1, b2
    N, C, H, W = x_nchw.shape
    HW = H * W
    act_dt = x_nchw.dtype
    itemsize = jnp.dtype(act_dt).itemsize

    # Free reshape only (no HBM transpose of the activation).
    x_flat = x_nchw.reshape(N, C, HW)

    # Weight slabs (dy, dx, Cout, Cin), cast once to the activation dtype so the
    # MXU operands stay bf16 when the activations are bf16 (f32 accumulation).
    w1m = jnp.transpose(w1, (0, 1, 3, 2)).astype(act_dt)
    w2m = jnp.transpose(w2, (0, 1, 3, 2)).astype(act_dt)

    # Pixel-coordinate planes for the in-kernel reflection fix-ups (avoids vector
    # integer div/mod inside the kernel).
    col_idx = jnp.broadcast_to(
        jnp.arange(W, dtype=jnp.int32)[None, :], (H, W)).reshape(1, HW)
    row_idx = jnp.broadcast_to(
        jnp.arange(H, dtype=jnp.int32)[:, None], (H, W)).reshape(1, HW)

    # Generation-aware VMEM budget: double-buffered I/O blocks + weights + in-kernel
    # temporaries (rolled/shifted planes in the activation dtype, f32 accumulators).
    try:
        vmem_cap = int(pltpu.get_tpu_info().vmem_capacity_bytes)
    except Exception:  # pragma: no cover - e.g. interpret mode
        vmem_cap = 128 * 1024 * 1024
    plane = C * HW
    working = (4 * plane * itemsize          # in/out blocks, double-buffered
               + 4 * 9 * C * C * itemsize    # two weight slabs, double-buffered
               + 4 * HW * 4                  # col/row coordinate planes
               + 12 * plane * itemsize       # rolled/shifted planes (act dtype)
               + 10 * plane * 4)             # f32 acc / h / norm temporaries
    vmem_limit = int(min(max(2 * working, 32 * 1024 * 1024), (3 * vmem_cap) // 4))

    cost = pl.CostEstimate(
        flops=2 * 2 * 9 * C * C * HW * N,            # two 3x3 convs
        transcendentals=2 * N * C,                   # rsqrt per channel per conv
        bytes_accessed=2 * N * plane * itemsize + 2 * 9 * C * C * itemsize + 2 * HW * 4,
    )

    kernel = _make_resnet_block_kernel(H, W, C, act_dt)
    out_flat = pl.pallas_call(
        kernel,
        out_shape=jax.ShapeDtypeStruct((N, C, HW), act_dt),
        grid=(N,),
        in_specs=[
            pl.BlockSpec((1, C, HW), lambda n: (n, 0, 0)),
            pl.BlockSpec((1, HW), lambda n: (0, 0)),
            pl.BlockSpec((1, HW), lambda n: (0, 0)),
            pl.BlockSpec((3, 3, C, C), lambda n: (0, 0, 0, 0)),
            pl.BlockSpec((3, 3, C, C), lambda n: (0, 0, 0, 0)),
        ],
        out_specs=pl.BlockSpec((1, C, HW), lambda n: (n, 0, 0)),
        compiler_params=pltpu.CompilerParams(
            dimension_semantics=("parallel",),
            vmem_limit_bytes=vmem_limit,
        ),
        cost_estimate=cost,
    )(x_flat, col_idx, row_idx, w1m, w2m)

    return out_flat.reshape(N, C, H, W)


def resnet_block_reference(x_nchw, w1, b1, w2, b2):
    """Pure-JAX reference, faithful to the PyTorch module (including the bias,
    which mathematically cancels under InstanceNorm(affine=False))."""
    x = jnp.transpose(x_nchw, (0, 2, 3, 1))

    def conv_in(inp, w, b):
        xp = jnp.pad(inp, ((0, 0), (1, 1), (1, 1), (0, 0)), mode="reflect")
        y = lax.conv_general_dilated(
            xp, w, (1, 1), "VALID", dimension_numbers=("NHWC", "HWIO", "NHWC")
        )
        y = y + b
        m = jnp.mean(y, axis=(1, 2), keepdims=True)
        v = jnp.mean((y - m) ** 2, axis=(1, 2), keepdims=True)
        return (y - m) * lax.rsqrt(v + EPS)

    h = jnp.maximum(conv_in(x, w1, b1), 0.0)
    out = x + conv_in(h, w2, b2)
    return jnp.transpose(out, (0, 3, 1, 2))


if __name__ == "__main__":
    # Small shapes consistent with the module: dim (channels) = 4, spatial = 16.
    N, C, H, W = 2, 4, 16, 16
    key = jax.random.PRNGKey(0)
    kx, k1, kb1, k2, kb2 = jax.random.split(key, 5)

    x = jax.random.normal(kx, (N, C, H, W), jnp.float32)
    # Conv weights in HWIO layout (3, 3, Cin, Cout); deterministic init.
    w1 = 0.1 * jax.random.normal(k1, (3, 3, C, C), jnp.float32)
    b1 = 0.1 * jax.random.normal(kb1, (C,), jnp.float32)
    w2 = 0.1 * jax.random.normal(k2, (3, 3, C, C), jnp.float32)
    b2 = 0.1 * jax.random.normal(kb2, (C,), jnp.float32)

    out = jax.jit(resnet_block)(x, w1, b1, w2, b2)
    out = jax.block_until_ready(out)

    ref = jax.block_until_ready(resnet_block_reference(x, w1, b1, w2, b2))
    assert out.shape == (N, C, H, W)
    assert jnp.allclose(out, ref, atol=1e-4, rtol=1e-4), "mismatch vs reference"

    print("KERNEL_OK")
</pallas_src>

<mosaic_0001>
module attributes {stable_mosaic.version = 11 : i64} {
  func.func @kernel(%arg0: i32, %arg1: memref<1x4x256xf32, #tpu.memory_space<vmem>>, %arg2: memref<1x256xi32, #tpu.memory_space<vmem>>, %arg3: memref<1x256xi32, #tpu.memory_space<vmem>>, %arg4: memref<3x3x4x4xf32, #tpu.memory_space<vmem>>, %arg5: memref<3x3x4x4xf32, #tpu.memory_space<vmem>>, %arg6: memref<1x4x256xf32, #tpu.memory_space<vmem>>) attributes {dimension_semantics = [#tpu.dimension_semantics<parallel>], iteration_bounds = array<i64: 2>, scalar_prefetch = 0 : i64, scratch_operands = 0 : i64, tpu.core_type = #tpu.core_type<tc>, window_params = [{transform_indices = @transform_0, window_bounds = array<i64: 1, 4, 256>}, {pipeline_mode = #tpu.pipeline_mode<synchronous>, transform_indices = @transform_1, window_bounds = array<i64: 1, 256>}, {pipeline_mode = #tpu.pipeline_mode<synchronous>, transform_indices = @transform_2, window_bounds = array<i64: 1, 256>}, {pipeline_mode = #tpu.pipeline_mode<synchronous>, transform_indices = @transform_3, window_bounds = array<i64: 3, 3, 4, 4>}, {pipeline_mode = #tpu.pipeline_mode<synchronous>, transform_indices = @transform_4, window_bounds = array<i64: 3, 3, 4, 4>}, {transform_indices = @transform_5, window_bounds = array<i64: 1, 4, 256>}]} {
    %c0 = arith.constant 0 : index
    %c0_0 = arith.constant 0 : index
    %0 = vector.load %arg2[%c0, %c0_0] : memref<1x256xi32, #tpu.memory_space<vmem>>, vector<1x256xi32>
    %1 = vector.shape_cast %0 : vector<1x256xi32> to vector<1x256xi32>
    %2 = vector.broadcast %1 : vector<1x256xi32> to vector<4x256xi32>
    %c0_1 = arith.constant 0 : index
    %c0_2 = arith.constant 0 : index
    %3 = vector.load %arg3[%c0_1, %c0_2] : memref<1x256xi32, #tpu.memory_space<vmem>>, vector<1x256xi32>
    %4 = vector.shape_cast %3 : vector<1x256xi32> to vector<1x256xi32>
    %5 = vector.broadcast %4 : vector<1x256xi32> to vector<4x256xi32>
    %c0_i32 = arith.constant 0 : i32
    %6 = vector.broadcast %c0_i32 : i32 to vector<4x256xi32>
    %7 = arith.cmpi eq, %2, %6 : vector<4x256xi32>
    %c15_i32 = arith.constant 15 : i32
    %8 = vector.broadcast %c15_i32 : i32 to vector<4x256xi32>
    %9 = arith.cmpi eq, %2, %8 : vector<4x256xi32>
    %c0_i32_3 = arith.constant 0 : i32
    %10 = vector.broadcast %c0_i32_3 : i32 to vector<4x256xi32>
    %11 = arith.cmpi eq, %5, %10 : vector<4x256xi32>
    %c15_i32_4 = arith.constant 15 : i32
    %12 = vector.broadcast %c15_i32_4 : i32 to vector<4x256xi32>
    %13 = arith.cmpi eq, %5, %12 : vector<4x256xi32>
    %c0_5 = arith.constant 0 : index
    %c0_6 = arith.constant 0 : index
    %c0_7 = arith.constant 0 : index
    %14 = vector.load %arg1[%c0_5, %c0_6, %c0_7] : memref<1x4x256xf32, #tpu.memory_space<vmem>>, vector<1x4x256xf32>
    %15 = vector.shape_cast %14 : vector<1x4x256xf32> to vector<4x256xf32>
    %c1_i32 = arith.constant 1 : i32
    %16 = tpu.dynamic_rotate %15 by %c1_i32 dim 1 : vector<4x256xf32>, i32 -> vector<4x256xf32>
    %c255_i32 = arith.constant 255 : i32
    %17 = tpu.dynamic_rotate %15 by %c255_i32 dim 1 : vector<4x256xf32>, i32 -> vector<4x256xf32>
    %18 = arith.select %7, %17, %16 : vector<4x256xi1>, vector<4x256xf32>
    %19 = arith.select %9, %16, %17 : vector<4x256xi1>, vector<4x256xf32>
    %cst = arith.constant 0.000000e+00 : f32
    %20 = vector.broadcast %cst : f32 to vector<4x256xf32>
    %c16_i32 = arith.constant 16 : i32
    %21 = tpu.dynamic_rotate %18 by %c16_i32 dim 1 : vector<4x256xf32>, i32 -> vector<4x256xf32>
    %c240_i32 = arith.constant 240 : i32
    %22 = tpu.dynamic_rotate %18 by %c240_i32 dim 1 : vector<4x256xf32>, i32 -> vector<4x256xf32>
    %23 = arith.select %11, %22, %21 : vector<4x256xi1>, vector<4x256xf32>
    %24 = arith.select %13, %21, %22 : vector<4x256xi1>, vector<4x256xf32>
    %c0_8 = arith.constant 0 : index
    %c0_9 = arith.constant 0 : index
    %c0_10 = arith.constant 0 : index
    %c0_11 = arith.constant 0 : index
    %25 = vector.load %arg4[%c0_8, %c0_9, %c0_10, %c0_11] : memref<3x3x4x4xf32, #tpu.memory_space<vmem>>, vector<1x1x4x4xf32>
    %26 = vector.shape_cast %25 : vector<1x1x4x4xf32> to vector<4x4xf32>
    %cst_12 = arith.constant dense<0.000000e+00> : vector<4x256xf32>
    %27 = tpu.matmul %26, %23, %cst_12 {dimension_numbers = #tpu.dot_dimension_numbers<[1], [0], [0], [1], [0, 0, 1, 1], [], []>} : vector<4x4xf32>, vector<4x256xf32>, vector<4x256xf32> -> vector<4x256xf32>
    %28 = arith.addf %20, %27 : vector<4x256xf32>
    %c1 = arith.constant 1 : index
    %c0_13 = arith.constant 0 : index
    %c0_14 = arith.constant 0 : index
    %c0_15 = arith.constant 0 : index
    %29 = vector.load %arg4[%c1, %c0_13, %c0_14, %c0_15] : memref<3x3x4x4xf32, #tpu.memory_space<vmem>>, vector<1x1x4x4xf32>
    %30 = vector.shape_cast %29 : vector<1x1x4x4xf32> to vector<4x4xf32>
    %cst_16 = arith.constant dense<0.000000e+00> : vector<4x256xf32>
    %31 = tpu.matmul %30, %18, %cst_16 {dimension_numbers = #tpu.dot_dimension_numbers<[1], [0], [0], [1], [0, 0, 1, 1], [], []>} : vector<4x4xf32>, vector<4x256xf32>, vector<4x256xf32> -> vector<4x256xf32>
    %32 = arith.addf %28, %31 : vector<4x256xf32>
    %c2 = arith.constant 2 : index
    %c0_17 = arith.constant 0 : index
    %c0_18 = arith.constant 0 : index
    %c0_19 = arith.constant 0 : index
    %33 = vector.load %arg4[%c2, %c0_17, %c0_18, %c0_19] : memref<3x3x4x4xf32, #tpu.memory_space<vmem>>, vector<1x1x4x4xf32>
    %34 = vector.shape_cast %33 : vector<1x1x4x4xf32> to vector<4x4xf32>
    %cst_20 = arith.constant dense<0.000000e+00> : vector<4x256xf32>
    %35 = tpu.matmul %34, %24, %cst_20 {dimension_numbers = #tpu.dot_dimension_numbers<[1], [0], [0], [1], [0, 0, 1, 1], [], []>} : vector<4x4xf32>, vector<4x256xf32>, vector<4x256xf32> -> vector<4x256xf32>
    %36 = arith.addf %32, %35 : vector<4x256xf32>
    %c16_i32_21 = arith.constant 16 : i32
    %37 = tpu.dynamic_rotate %15 by %c16_i32_21 dim 1 : vector<4x256xf32>, i32 -> vector<4x256xf32>
    %c240_i32_22 = arith.constant 240 : i32
    %38 = tpu.dynamic_rotate %15 by %c240_i32_22 dim 1 : vector<4x256xf32>, i32 -> vector<4x256xf32>
    %39 = arith.select %11, %38, %37 : vector<4x256xi1>, vector<4x256xf32>
    %40 = arith.select %13, %37, %38 : vector<4x256xi1>, vector<4x256xf32>
    %c0_23 = arith.constant 0 : index
    %c1_24 = arith.constant 1 : index
    %c0_25 = arith.constant 0 : index
    %c0_26 = arith.constant 0 : index
    %41 = vector.load %arg4[%c0_23, %c1_24, %c0_25, %c0_26] : memref<3x3x4x4xf32, #tpu.memory_space<vmem>>, vector<1x1x4x4xf32>
    %42 = vector.shape_cast %41 : vector<1x1x4x4xf32> to vector<4x4xf32>
    %cst_27 = arith.constant dense<0.000000e+00> : vector<4x256xf32>
    %43 = tpu.matmul %42, %39, %cst_27 {dimension_numbers = #tpu.dot_dimension_numbers<[1], [0], [0], [1], [0, 0, 1, 1], [], []>} : vector<4x4xf32>, vector<4x256xf32>, vector<4x256xf32> -> vector<4x256xf32>
    %44 = arith.addf %36, %43 : vector<4x256xf32>
    %c1_28 = arith.constant 1 : index
    %c1_29 = arith.constant 1 : index
    %c0_30 = arith.constant 0 : index
    %c0_31 = arith.constant 0 : index
    %45 = vector.load %arg4[%c1_28, %c1_29, %c0_30, %c0_31] : memref<3x3x4x4xf32, #tpu.memory_space<vmem>>, vector<1x1x4x4xf32>
    %46 = vector.shape_cast %45 : vector<1x1x4x4xf32> to vector<4x4xf32>
    %cst_32 = arith.constant dense<0.000000e+00> : vector<4x256xf32>
    %47 = tpu.matmul %46, %15, %cst_32 {dimension_numbers = #tpu.dot_dimension_numbers<[1], [0], [0], [1], [0, 0, 1, 1], [], []>} : vector<4x4xf32>, vector<4x256xf32>, vector<4x256xf32> -> vector<4x256xf32>
    %48 = arith.addf %44, %47 : vector<4x256xf32>
    %c2_33 = arith.constant 2 : index
    %c1_34 = arith.constant 1 : index
    %c0_35 = arith.constant 0 : index
    %c0_36 = arith.constant 0 : index
    %49 = vector.load %arg4[%c2_33, %c1_34, %c0_35, %c0_36] : memref<3x3x4x4xf32, #tpu.memory_space<vmem>>, vector<1x1x4x4xf32>
    %50 = vector.shape_cast %49 : vector<1x1x4x4xf32> to vector<4x4xf32>
    %cst_37 = arith.constant dense<0.000000e+00> : vector<4x256xf32>
    %51 = tpu.matmul %50, %40, %cst_37 {dimension_numbers = #tpu.dot_dimension_numbers<[1], [0], [0], [1], [0, 0, 1, 1], [], []>} : vector<4x4xf32>, vector<4x256xf32>, vector<4x256xf32> -> vector<4x256xf32>
    %52 = arith.addf %48, %51 : vector<4x256xf32>
    %c16_i32_38 = arith.constant 16 : i32
    %53 = tpu.dynamic_rotate %19 by %c16_i32_38 dim 1 : vector<4x256xf32>, i32 -> vector<4x256xf32>
    %c240_i32_39 = arith.constant 240 : i32
    %54 = tpu.dynamic_rotate %19 by %c240_i32_39 dim 1 : vector<4x256xf32>, i32 -> vector<4x256xf32>
    %55 = arith.select %11, %54, %53 : vector<4x256xi1>, vector<4x256xf32>
    %56 = arith.select %13, %53, %54 : vector<4x256xi1>, vector<4x256xf32>
    %c0_40 = arith.constant 0 : index
    %c2_41 = arith.constant 2 : index
    %c0_42 = arith.constant 0 : index
    %c0_43 = arith.constant 0 : index
    %57 = vector.load %arg4[%c0_40, %c2_41, %c0_42, %c0_43] : memref<3x3x4x4xf32, #tpu.memory_space<vmem>>, vector<1x1x4x4xf32>
    %58 = vector.shape_cast %57 : vector<1x1x4x4xf32> to vector<4x4xf32>
    %cst_44 = arith.constant dense<0.000000e+00> : vector<4x256xf32>
    %59 = tpu.matmul %58, %55, %cst_44 {dimension_numbers = #tpu.dot_dimension_numbers<[1], [0], [0], [1], [0, 0, 1, 1], [], []>} : vector<4x4xf32>, vector<4x256xf32>, vector<4x256xf32> -> vector<4x256xf32>
    %60 = arith.addf %52, %59 : vector<4x256xf32>
    %c1_45 = arith.constant 1 : index
    %c2_46 = arith.constant 2 : index
    %c0_47 = arith.constant 0 : index
    %c0_48 = arith.constant 0 : index
    %61 = vector.load %arg4[%c1_45, %c2_46, %c0_47, %c0_48] : memref<3x3x4x4xf32, #tpu.memory_space<vmem>>, vector<1x1x4x4xf32>
    %62 = vector.shape_cast %61 : vector<1x1x4x4xf32> to vector<4x4xf32>
    %cst_49 = arith.constant dense<0.000000e+00> : vector<4x256xf32>
    %63 = tpu.matmul %62, %19, %cst_49 {dimension_numbers = #tpu.dot_dimension_numbers<[1], [0], [0], [1], [0, 0, 1, 1], [], []>} : vector<4x4xf32>, vector<4x256xf32>, vector<4x256xf32> -> vector<4x256xf32>
    %64 = arith.addf %60, %63 : vector<4x256xf32>
    %c2_50 = arith.constant 2 : index
    %c2_51 = arith.constant 2 : index
    %c0_52 = arith.constant 0 : index
    %c0_53 = arith.constant 0 : index
    %65 = vector.load %arg4[%c2_50, %c2_51, %c0_52, %c0_53] : memref<3x3x4x4xf32, #tpu.memory_space<vmem>>, vector<1x1x4x4xf32>
    %66 = vector.shape_cast %65 : vector<1x1x4x4xf32> to vector<4x4xf32>
    %cst_54 = arith.constant dense<0.000000e+00> : vector<4x256xf32>
    %67 = tpu.matmul %66, %56, %cst_54 {dimension_numbers = #tpu.dot_dimension_numbers<[1], [0], [0], [1], [0, 0, 1, 1], [], []>} : vector<4x4xf32>, vector<4x256xf32>, vector<4x256xf32> -> vector<4x256xf32>
    %68 = arith.addf %64, %67 : vector<4x256xf32>
    %cst_55 = arith.constant dense<0.000000e+00> : vector<4xf32>
    %69 = vector.multi_reduction <add>, %68, %cst_55 [1] : vector<4x256xf32> to vector<4xf32>
    %70 = vector.shape_cast %69 : vector<4xf32> to vector<4x1xf32>
    %cst_56 = arith.constant 3.906250e-03 : f32
    %71 = vector.broadcast %cst_56 : f32 to vector<4x1xf32>
    %72 = arith.mulf %70, %71 : vector<4x1xf32>
    %73 = vector.broadcast %72 : vector<4x1xf32> to vector<4x256xf32>
    %74 = arith.subf %68, %73 : vector<4x256xf32>
    %75 = arith.mulf %74, %74 : vector<4x256xf32>
    %cst_57 = arith.constant dense<0.000000e+00> : vector<4xf32>
    %76 = vector.multi_reduction <add>, %75, %cst_57 [1] : vector<4x256xf32> to vector<4xf32>
    %77 = vector.shape_cast %76 : vector<4xf32> to vector<4x1xf32>
    %cst_58 = arith.constant 3.906250e-03 : f32
    %78 = vector.broadcast %cst_58 : f32 to vector<4x1xf32>
    %79 = arith.mulf %77, %78 : vector<4x1xf32>
    %cst_59 = arith.constant 9.99999974E-6 : f32
    %80 = vector.broadcast %cst_59 : f32 to vector<4x1xf32>
    %81 = arith.addf %79, %80 : vector<4x1xf32>
    %82 = math.rsqrt %81 : vector<4x1xf32>
    %83 = vector.broadcast %82 : vector<4x1xf32> to vector<4x256xf32>
    %84 = arith.mulf %74, %83 : vector<4x256xf32>
    %cst_60 = arith.constant 0.000000e+00 : f32
    %85 = vector.broadcast %cst_60 : f32 to vector<4x256xf32>
    %86 = arith.maximumf %84, %85 : vector<4x256xf32>
    %c1_i32_61 = arith.constant 1 : i32
    %87 = tpu.dynamic_rotate %86 by %c1_i32_61 dim 1 : vector<4x256xf32>, i32 -> vector<4x256xf32>
    %c255_i32_62 = arith.constant 255 : i32
    %88 = tpu.dynamic_rotate %86 by %c255_i32_62 dim 1 : vector<4x256xf32>, i32 -> vector<4x256xf32>
    %89 = arith.select %7, %88, %87 : vector<4x256xi1>, vector<4x256xf32>
    %90 = arith.select %9, %87, %88 : vector<4x256xi1>, vector<4x256xf32>
    %cst_63 = arith.constant 0.000000e+00 : f32
    %91 = vector.broadcast %cst_63 : f32 to vector<4x256xf32>
    %c16_i32_64 = arith.constant 16 : i32
    %92 = tpu.dynamic_rotate %89 by %c16_i32_64 dim 1 : vector<4x256xf32>, i32 -> vector<4x256xf32>
    %c240_i32_65 = arith.constant 240 : i32
    %93 = tpu.dynamic_rotate %89 by %c240_i32_65 dim 1 : vector<4x256xf32>, i32 -> vector<4x256xf32>
    %94 = arith.select %11, %93, %92 : vector<4x256xi1>, vector<4x256xf32>
    %95 = arith.select %13, %92, %93 : vector<4x256xi1>, vector<4x256xf32>
    %c0_66 = arith.constant 0 : index
    %c0_67 = arith.constant 0 : index
    %c0_68 = arith.constant 0 : index
    %c0_69 = arith.constant 0 : index
    %96 = vector.load %arg5[%c0_66, %c0_67, %c0_68, %c0_69] : memref<3x3x4x4xf32, #tpu.memory_space<vmem>>, vector<1x1x4x4xf32>
    %97 = vector.shape_cast %96 : vector<1x1x4x4xf32> to vector<4x4xf32>
    %cst_70 = arith.constant dense<0.000000e+00> : vector<4x256xf32>
    %98 = tpu.matmul %97, %94, %cst_70 {dimension_numbers = #tpu.dot_dimension_numbers<[1], [0], [0], [1], [0, 0, 1, 1], [], []>} : vector<4x4xf32>, vector<4x256xf32>, vector<4x256xf32> -> vector<4x256xf32>
    %99 = arith.addf %91, %98 : vector<4x256xf32>
    %c1_71 = arith.constant 1 : index
    %c0_72 = arith.constant 0 : index
    %c0_73 = arith.constant 0 : index
    %c0_74 = arith.constant 0 : index
    %100 = vector.load %arg5[%c1_71, %c0_72, %c0_73, %c0_74] : memref<3x3x4x4xf32, #tpu.memory_space<vmem>>, vector<1x1x4x4xf32>
    %101 = vector.shape_cast %100 : vector<1x1x4x4xf32> to vector<4x4xf32>
    %cst_75 = arith.constant dense<0.000000e+00> : vector<4x256xf32>
    %102 = tpu.matmul %101, %89, %cst_75 {dimension_numbers = #tpu.dot_dimension_numbers<[1], [0], [0], [1], [0, 0, 1, 1], [], []>} : vector<4x4xf32>, vector<4x256xf32>, vector<4x256xf32> -> vector<4x256xf32>
    %103 = arith.addf %99, %102 : vector<4x256xf32>
    %c2_76 = arith.constant 2 : index
    %c0_77 = arith.constant 0 : index
    %c0_78 = arith.constant 0 : index
    %c0_79 = arith.constant 0 : index
    %104 = vector.load %arg5[%c2_76, %c0_77, %c0_78, %c0_79] : memref<3x3x4x4xf32, #tpu.memory_space<vmem>>, vector<1x1x4x4xf32>
    %105 = vector.shape_cast %104 : vector<1x1x4x4xf32> to vector<4x4xf32>
    %cst_80 = arith.constant dense<0.000000e+00> : vector<4x256xf32>
    %106 = tpu.matmul %105, %95, %cst_80 {dimension_numbers = #tpu.dot_dimension_numbers<[1], [0], [0], [1], [0, 0, 1, 1], [], []>} : vector<4x4xf32>, vector<4x256xf32>, vector<4x256xf32> -> vector<4x256xf32>
    %107 = arith.addf %103, %106 : vector<4x256xf32>
    %c16_i32_81 = arith.constant 16 : i32
    %108 = tpu.dynamic_rotate %86 by %c16_i32_81 dim 1 : vector<4x256xf32>, i32 -> vector<4x256xf32>
    %c240_i32_82 = arith.constant 240 : i32
    %109 = tpu.dynamic_rotate %86 by %c240_i32_82 dim 1 : vector<4x256xf32>, i32 -> vector<4x256xf32>
    %110 = arith.select %11, %109, %108 : vector<4x256xi1>, vector<4x256xf32>
    %111 = arith.select %13, %108, %109 : vector<4x256xi1>, vector<4x256xf32>
    %c0_83 = arith.constant 0 : index
    %c1_84 = arith.constant 1 : index
    %c0_85 = arith.constant 0 : index
    %c0_86 = arith.constant 0 : index
    %112 = vector.load %arg5[%c0_83, %c1_84, %c0_85, %c0_86] : memref<3x3x4x4xf32, #tpu.memory_space<vmem>>, vector<1x1x4x4xf32>
    %113 = vector.shape_cast %112 : vector<1x1x4x4xf32> to vector<4x4xf32>
    %cst_87 = arith.constant dense<0.000000e+00> : vector<4x256xf32>
    %114 = tpu.matmul %113, %110, %cst_87 {dimension_numbers = #tpu.dot_dimension_numbers<[1], [0], [0], [1], [0, 0, 1, 1], [], []>} : vector<4x4xf32>, vector<4x256xf32>, vector<4x256xf32> -> vector<4x256xf32>
    %115 = arith.addf %107, %114 : vector<4x256xf32>
    %c1_88 = arith.constant 1 : index
    %c1_89 = arith.constant 1 : index
    %c0_90 = arith.constant 0 : index
    %c0_91 = arith.constant 0 : index
    %116 = vector.load %arg5[%c1_88, %c1_89, %c0_90, %c0_91] : memref<3x3x4x4xf32, #tpu.memory_space<vmem>>, vector<1x1x4x4xf32>
    %117 = vector.shape_cast %116 : vector<1x1x4x4xf32> to vector<4x4xf32>
    %cst_92 = arith.constant dense<0.000000e+00> : vector<4x256xf32>
    %118 = tpu.matmul %117, %86, %cst_92 {dimension_numbers = #tpu.dot_dimension_numbers<[1], [0], [0], [1], [0, 0, 1, 1], [], []>} : vector<4x4xf32>, vector<4x256xf32>, vector<4x256xf32> -> vector<4x256xf32>
    %119 = arith.addf %115, %118 : vector<4x256xf32>
    %c2_93 = arith.constant 2 : index
    %c1_94 = arith.constant 1 : index
    %c0_95 = arith.constant 0 : index
    %c0_96 = arith.constant 0 : index
    %120 = vector.load %arg5[%c2_93, %c1_94, %c0_95, %c0_96] : memref<3x3x4x4xf32, #tpu.memory_space<vmem>>, vector<1x1x4x4xf32>
    %121 = vector.shape_cast %120 : vector<1x1x4x4xf32> to vector<4x4xf32>
    %cst_97 = arith.constant dense<0.000000e+00> : vector<4x256xf32>
    %122 = tpu.matmul %121, %111, %cst_97 {dimension_numbers = #tpu.dot_dimension_numbers<[1], [0], [0], [1], [0, 0, 1, 1], [], []>} : vector<4x4xf32>, vector<4x256xf32>, vector<4x256xf32> -> vector<4x256xf32>
    %123 = arith.addf %119, %122 : vector<4x256xf32>
    %c16_i32_98 = arith.constant 16 : i32
    %124 = tpu.dynamic_rotate %90 by %c16_i32_98 dim 1 : vector<4x256xf32>, i32 -> vector<4x256xf32>
    %c240_i32_99 = arith.constant 240 : i32
    %125 = tpu.dynamic_rotate %90 by %c240_i32_99 dim 1 : vector<4x256xf32>, i32 -> vector<4x256xf32>
    %126 = arith.select %11, %125, %124 : vector<4x256xi1>, vector<4x256xf32>
    %127 = arith.select %13, %124, %125 : vector<4x256xi1>, vector<4x256xf32>
    %c0_100 = arith.constant 0 : index
    %c2_101 = arith.constant 2 : index
    %c0_102 = arith.constant 0 : index
    %c0_103 = arith.constant 0 : index
    %128 = vector.load %arg5[%c0_100, %c2_101, %c0_102, %c0_103] : memref<3x3x4x4xf32, #tpu.memory_space<vmem>>, vector<1x1x4x4xf32>
    %129 = vector.shape_cast %128 : vector<1x1x4x4xf32> to vector<4x4xf32>
    %cst_104 = arith.constant dense<0.000000e+00> : vector<4x256xf32>
    %130 = tpu.matmul %129, %126, %cst_104 {dimension_numbers = #tpu.dot_dimension_numbers<[1], [0], [0], [1], [0, 0, 1, 1], [], []>} : vector<4x4xf32>, vector<4x256xf32>, vector<4x256xf32> -> vector<4x256xf32>
    %131 = arith.addf %123, %130 : vector<4x256xf32>
    %c1_105 = arith.constant 1 : index
    %c2_106 = arith.constant 2 : index
    %c0_107 = arith.constant 0 : index
    %c0_108 = arith.constant 0 : index
    %132 = vector.load %arg5[%c1_105, %c2_106, %c0_107, %c0_108] : memref<3x3x4x4xf32, #tpu.memory_space<vmem>>, vector<1x1x4x4xf32>
    %133 = vector.shape_cast %132 : vector<1x1x4x4xf32> to vector<4x4xf32>
    %cst_109 = arith.constant dense<0.000000e+00> : vector<4x256xf32>
    %134 = tpu.matmul %133, %90, %cst_109 {dimension_numbers = #tpu.dot_dimension_numbers<[1], [0], [0], [1], [0, 0, 1, 1], [], []>} : vector<4x4xf32>, vector<4x256xf32>, vector<4x256xf32> -> vector<4x256xf32>
    %135 = arith.addf %131, %134 : vector<4x256xf32>
    %c2_110 = arith.constant 2 : index
    %c2_111 = arith.constant 2 : index
    %c0_112 = arith.constant 0 : index
    %c0_113 = arith.constant 0 : index
    %136 = vector.load %arg5[%c2_110, %c2_111, %c0_112, %c0_113] : memref<3x3x4x4xf32, #tpu.memory_space<vmem>>, vector<1x1x4x4xf32>
    %137 = vector.shape_cast %136 : vector<1x1x4x4xf32> to vector<4x4xf32>
    %cst_114 = arith.constant dense<0.000000e+00> : vector<4x256xf32>
    %138 = tpu.matmul %137, %127, %cst_114 {dimension_numbers = #tpu.dot_dimension_numbers<[1], [0], [0], [1], [0, 0, 1, 1], [], []>} : vector<4x4xf32>, vector<4x256xf32>, vector<4x256xf32> -> vector<4x256xf32>
    %139 = arith.addf %135, %138 : vector<4x256xf32>
    %cst_115 = arith.constant dense<0.000000e+00> : vector<4xf32>
    %140 = vector.multi_reduction <add>, %139, %cst_115 [1] : vector<4x256xf32> to vector<4xf32>
    %141 = vector.shape_cast %140 : vector<4xf32> to vector<4x1xf32>
    %cst_116 = arith.constant 3.906250e-03 : f32
    %142 = vector.broadcast %cst_116 : f32 to vector<4x1xf32>
    %143 = arith.mulf %141, %142 : vector<4x1xf32>
    %144 = vector.broadcast %143 : vector<4x1xf32> to vector<4x256xf32>
    %145 = arith.subf %139, %144 : vector<4x256xf32>
    %146 = arith.mulf %145, %145 : vector<4x256xf32>
    %cst_117 = arith.constant dense<0.000000e+00> : vector<4xf32>
    %147 = vector.multi_reduction <add>, %146, %cst_117 [1] : vector<4x256xf32> to vector<4xf32>
    %148 = vector.shape_cast %147 : vector<4xf32> to vector<4x1xf32>
    %cst_118 = arith.constant 3.906250e-03 : f32
    %149 = vector.broadcast %cst_118 : f32 to vector<4x1xf32>
    %150 = arith.mulf %148, %149 : vector<4x1xf32>
    %cst_119 = arith.constant 9.99999974E-6 : f32
    %151 = vector.broadcast %cst_119 : f32 to vector<4x1xf32>
    %152 = arith.addf %150, %151 : vector<4x1xf32>
    %153 = math.rsqrt %152 : vector<4x1xf32>
    %154 = vector.broadcast %153 : vector<4x1xf32> to vector<4x256xf32>
    %155 = arith.mulf %145, %154 : vector<4x256xf32>
    %156 = arith.addf %15, %155 : vector<4x256xf32>
    %c0_120 = arith.constant 0 : index
    %c0_121 = arith.constant 0 : index
    %c0_122 = arith.constant 0 : index
    %157 = vector.load %arg6[%c0_120, %c0_121, %c0_122] : memref<1x4x256xf32, #tpu.memory_space<vmem>>, vector<1x4x256xf32>
    %158 = vector.shape_cast %157 : vector<1x4x256xf32> to vector<4x256xf32>
    %159 = vector.shape_cast %156 : vector<4x256xf32> to vector<1x4x256xf32>
    tpu.vector_store %arg6[%c0_120, %c0_121, %c0_122], %159 {strides = array<i32>} : memref<1x4x256xf32, #tpu.memory_space<vmem>>, vector<1x4x256xf32>,
    return
  }
  func.func @transform_0(%arg0: i32) -> (i32, i32, i32) {
    %c0_i32 = arith.constant 0 : i32
    %c0_i32_0 = arith.constant 0 : i32
    %c0_i32_1 = arith.constant 0 : i32
    return %arg0, %c0_i32, %c0_i32_0 : i32, i32, i32
  }
  func.func @transform_1(%arg0: i32) -> (i32, i32) {
    %c0_i32 = arith.constant 0 : i32
    %c0_i32_0 = arith.constant 0 : i32
    %c0_i32_1 = arith.constant 0 : i32
    return %c0_i32, %c0_i32_0 : i32, i32
  }
  func.func @transform_2(%arg0: i32) -> (i32, i32) {
    %c0_i32 = arith.constant 0 : i32
    %c0_i32_0 = arith.constant 0 : i32
    %c0_i32_1 = arith.constant 0 : i32
    return %c0_i32, %c0_i32_0 : i32, i32
  }
  func.func @transform_3(%arg0: i32) -> (i32, i32, i32, i32) {
    %c0_i32 = arith.constant 0 : i32
    %c0_i32_0 = arith.constant 0 : i32
    %c0_i32_1 = arith.constant 0 : i32
    %c0_i32_2 = arith.constant 0 : i32
    %c0_i32_3 = arith.constant 0 : i32
    return %c0_i32, %c0_i32_0, %c0_i32_1, %c0_i32_2 : i32, i32, i32, i32
  }
  func.func @transform_4(%arg0: i32) -> (i32, i32, i32, i32) {
    %c0_i32 = arith.constant 0 : i32
    %c0_i32_0 = arith.constant 0 : i32
    %c0_i32_1 = arith.constant 0 : i32
    %c0_i32_2 = arith.constant 0 : i32
    %c0_i32_3 = arith.constant 0 : i32
    return %c0_i32, %c0_i32_0, %c0_i32_1, %c0_i32_2 : i32, i32, i32, i32
  }
  func.func @transform_5(%arg0: i32) -> (i32, i32, i32) {
    %c0_i32 = arith.constant 0 : i32
    %c0_i32_0 = arith.constant 0 : i32
    %c0_i32_1 = arith.constant 0 : i32
    return %arg0, %c0_i32, %c0_i32_0 : i32, i32, i32
  }
}

</mosaic_0001>

<bundles_post_ra>
// kernel: resnet_block.1
= control target key start
LH: loop header
LB: loop body
LE: loop exit
PB: predicated region body
PF: predicated region fallthrough
CT: control target
= control target key end

     0   :  { %s2138_s18 = smov 0   ;;  %s2518_s0 = inlined_call_operand.vmem [shape: f32[2,4,256], index: 0, kind: input, shape index: {}]   ;;  %s2519_s1 = inlined_call_operand.vmem [shape: s32[1,256], index: 1, kind: input, shape index: {}]   ;;  %s2520_s2 = inlined_call_operand.vmem [shape: s32[1,256], index: 2, kind: input, shape index: {}]   ;;  %s2521_s3 = inlined_call_operand.vmem [shape: f32[3,3,4,4], index: 3, kind: input, shape index: {}]   ;;  %s2522_s4 = inlined_call_operand.vmem [shape: f32[3,3,4,4], index: 4, kind: input, shape index: {}]   ;;  %s2523_s5 = inlined_call_operand.vmem [shape: f32[2,4,256], index: 5, kind: output, shape index: {}]  }
   0x1 LB: > { %s1994_s19 = sadd.s32 4294967295, %s2101_s18   ;;  %p1998_p0 = scmp.ge.s32.totalorder %s2101_s18, 1  ;;  %s2101_s18 = sphi %s2138_s18, %s15_s18  }
   0x2   : > { %p187_p1 = scmp.lt.s32.totalorder %s2101_s18, 3 }
   0x4   : > { %p188_p2 = pnand %p1998_p0, %p187_p1 }
   0x5   : > { %p215_p3 = scmp.lt.s32.totalorder (!%p188_p2), %s1994_s19, 1  ;;  %s2103_s24 = smov (!%p188_p2), 127  }
   0x6   : > { %191 = sbr.rel (%p188_p2) target bundleno = 1553 (0x611), region = 40  ;;  %s2104_s25 = smov (!%p188_p2), 1  }
   0x7   : > { %s2105_s26 = smov (!%p188_p2), 16   ;;  %s2107_s6 = smov (!%p188_p2), 112  }
   0xb   : > { %s2525_s19 = smov (!%p215_p3, %s1994_s19), 1  ;;  %v226_v2 = vlaneseq  ;;  %v225_v6 = vld [vmem:[%s2519_s1] sm:$0x3]  ;;  %v2106_v12 = vmov 0.0   ;;  %vm300_vm4 = vcmask 1043456   ;;  %vm296_vm5 = vcmask 31744  }
   0xc   : > { %s2075_s20 = sshll.u32 %s2525_s19, 3  ;;  %371 = vmatprep.mubr.f32.mxu0 %v2106_v12  ;;  %451 = vmatprep.mubr.f32.mxu1 %v2106_v12  ;;  %v2003_v21 = vld [vmem:[%s2521_s3 + $0xc] sm:$0xf]  ;;  %v234_v26 = vld [vmem:[%s2520_s2] sm:$0x3] }
   0xd   : > { %s219_s23 = scalar_lea.vmem %s2518_s0, %s2075_s20  ;;  %v227_v3 = vshrl.u32 %v226_v2, 7  ;;  %v2175_v7 = vand.u32 127, %v226_v2  ;;  %v293_v41 = vld [vmem:[%s2521_s3] sm:$0xf]  ;;  %v2010_v42 = vld [vmem:[%s2521_s3 + $0x18] sm:$0xf]  ;;  %s224_s29 = scalar_lea.vmem %s2523_s5, %s2075_s20 }
   0xe   : > { %v2154_v0 = vld [vmem:[%s219_s23] sm:$0xff]  ;;  %v2018_v52 = vld [vmem:[%s2521_s3 + $0x10] sm:$0xf]  ;;  %v2022_v57 = vld [vmem:[%s2521_s3 + $0x1c] sm:$0xf] }
   0xf   : > { %264 = vrot.lane.b32.xlu1 %v2154_v0, %s2103_s24  ;;  %255 = vrot.lane.b32.xlu0 %v2154_v0, %s2104_s25  ;;  %v2162_v1 = vcombine.high %v2154_v0, %v2154_v0  ;;  %v228_v4 = vsub.s32 0, %v227_v3  ;;  %v232_v5 = vsub.s32 1, %v227_v3  ;;  %vm268_vm0 = vcmp.lt.s32.totalorder %v2175_v7, 127  ;;  %v2014_v51 = vld [vmem:[%s2521_s3 + $0x4] sm:$0xf] }
  0x10   : > { %vm261_vm1 = vcmp.lt.s32.totalorder %v2175_v7, 1  ;;  %vm286_vm8 = vcmp.lt.s32.totalorder %v2175_v7, 112  ;;  %vm279_vm13 = vcmp.lt.s32.totalorder %v2175_v7, 16  ;;  %v2026_v3 = vld [vmem:[%s2521_s3 + $0x8] sm:$0xf] }
  0x11   : > { %v2177_v8 = vrot.slane %v225_v6, %v228_v4  ;;  %v2179_v9 = vrot.slane %v225_v6, %v232_v5  ;;  %v2231_v27 = vrot.slane %v234_v26, %v228_v4  ;;  %v2233_v28 = vrot.slane %v234_v26, %v232_v5  ;;  %v2030_v4 = vld [vmem:[%s2521_s3 + $0x14] sm:$0xf] }
  0x12   : > { %v2065_v7 = vld [vmem:[%s2522_s4 + $0x14] sm:$0xf] }
  0x13   : > { %266 = vrot.lane.b32.xlu1 %v2162_v1, %s2103_s24  ;;  %257 = vrot.lane.b32.xlu0 %v2162_v1, %s2104_s25  ;;  %vm243_vm2 = vcmp.eq.s32.totalorder %v2177_v8, 0  ;;  %vm244_vm3 = vcmp.eq.s32.totalorder %v2179_v9, 0  ;;  %vm245_vm6 = vcmp.eq.s32.totalorder %v2177_v8, 15  ;;  %vm246_vm7 = vcmp.eq.s32.totalorder %v2179_v9, 15 }
  0x14   : > { %vm249_vm9 = vcmp.eq.s32.totalorder %v2231_v27, 15  ;;  %vm250_vm10 = vcmp.eq.s32.totalorder %v2233_v28, 15  ;;  %vm248_vm11 = vcmp.eq.s32.totalorder %v2233_v28, 0  ;;  %vm247_vm12 = vcmp.eq.s32.totalorder %v2231_v27, 0 }
  0x17   : > { %544 = vrot.lane.b32.xlu1 %v2162_v1, %s2105_s26  ;;  %542 = vrot.lane.b32.xlu0 %v2154_v0, %s2105_s26 }
  0x81   : > { %v265_v10 = vpop.permute.xlu1 %264  ;;  %v256_v11 = vpop.permute.xlu0 %255 }
  0x85   : > { %v267_v13 = vpop.permute.xlu1 %266  ;;  %v258_v14 = vpop.permute.xlu0 %257 }
  0x86   : > { %v269_v15 = vsel %vm268_vm0, %v265_v10, %v267_v13  ;;  %v270_v16 = vsel %vm268_vm0, %v267_v13, %v265_v10  ;;  %v262_v17 = vsel %vm261_vm1, %v256_v11, %v258_v14  ;;  %v263_v18 = vsel %vm261_vm1, %v258_v14, %v256_v11  ;;  %v2034_v10 = vld [vmem:[%s2521_s3 + $0x20] sm:$0xf] }
  0x87   : > { %v271_v19 = vsel %vm243_vm2, %v269_v15, %v263_v18  ;;  %v272_v20 = vsel %vm244_vm3, %v270_v16, %v262_v17  ;;  %v2218_v22 = vsel %vm245_vm6, %v263_v18, %v269_v15  ;;  %v274_v23 = vsel %vm246_vm7, %v262_v17, %v270_v16 }
  0x88   : > { %275 = vrot.lane.b32.xlu0 %v271_v19, %s2105_s26  ;;  %277 = vrot.lane.b32.xlu1 %v272_v20, %s2105_s26 }
  0x89   : > { %2004 = vmatprep.subr.msk.mxu0 %vm300_vm4, %v272_v20  ;;  %v545_v24 = vpop.permute.xlu1 %544  ;;  %v543_v25 = vpop.permute.xlu0 %542 }
  0x8a   : > { %2005 = vmatpush1.msk.msra.mxu0 %vm300_vm4, %v271_v19  ;;  %v546_v43 = vsel %vm279_vm13, %v543_v25, %v545_v24  ;;  %v547_v46 = vsel %vm279_vm13, %v545_v24, %v543_v25 }
  0x8b   : > { %2006 = vmatmul.mubr.msk.f32.vlgmr.msra.gmra.mxu0 %vm296_vm5, %v2003_v21 }
  0x8c   : > { %282 = vrot.lane.b32.xlu0 %v271_v19, %s2107_s6  ;;  %284 = vrot.lane.b32.xlu1 %v272_v20, %s2107_s6 }
  0x8d   : > { %533 = vmatprep.mubr.f32.mxu0 %v2106_v12 }
  0x90   : > { %548 = vrot.lane.b32.xlu0 %v2154_v0, %s2107_s6  ;;  %550 = vrot.lane.b32.xlu1 %v2162_v1, %s2107_s6 }
  0x94   : > { %808 = vrot.lane.b32.xlu0 %v2218_v22, %s2105_s26  ;;  %810 = vrot.lane.b32.xlu1 %v274_v23, %s2105_s26 }
  0x98   : > { %814 = vrot.lane.b32.xlu0 %v2218_v22, %s2107_s6  ;;  %816 = vrot.lane.b32.xlu1 %v274_v23, %s2107_s6 }
  0xfa   : > { %v278_v29 = vpop.permute.xlu1 %277  ;;  %v276_v30 = vpop.permute.xlu0 %275 }
  0xfb   : > { %v280_v33 = vsel %vm279_vm13, %v276_v30, %v278_v29  ;;  %v281_v34 = vsel %vm279_vm13, %v278_v29, %v276_v30 }
  0xfe   : > { %v285_v31 = vpop.permute.xlu1 %284  ;;  %v283_v32 = vpop.permute.xlu0 %282 }
  0xff   : > { %v287_v35 = vsel %vm286_vm8, %v283_v32, %v285_v31  ;;  %v288_v36 = vsel %vm286_vm8, %v285_v31, %v283_v32 }
 0x100   : > { %v291_v37 = vsel %vm249_vm9, %v281_v34, %v287_v35  ;;  %v290_v38 = vsel %vm248_vm11, %v288_v36, %v280_v33  ;;  %v292_v39 = vsel %vm250_vm10, %v280_v33, %v288_v36  ;;  %v289_v40 = vsel %vm247_vm12, %v287_v35, %v281_v34 }
 0x101   : > { %2007 = vmatprep.subr.msk.mxu1 %vm300_vm4, %v290_v38  ;;  %2011 = vmatprep.subr.msk.mxu0 %vm300_vm4, %v292_v39 }
 0x102   : > { %v551_v44 = vpop.permute.xlu1 %550  ;;  %2008 = vmatpush1.msk.msra.mxu1 %vm300_vm4, %v289_v40  ;;  %2012 = vmatpush1.msk.msra.mxu0 %vm300_vm4, %v291_v37  ;;  %v549_v45 = vpop.permute.xlu0 %548 }
 0x103   : > { %v552_v47 = vsel %vm286_vm8, %v549_v45, %v551_v44  ;;  %v553_v48 = vsel %vm286_vm8, %v551_v44, %v549_v45  ;;  %2009 = vmatmul.mubr.msk.f32.vlgmr.msra.gmra.mxu1 %vm296_vm5, %v293_v41  ;;  %2013 = vmatmul.mubr.msk.f32.vlgmr.msra.gmra.mxu0 %vm296_vm5, %v2010_v42 }
 0x104   : > { %v554_v49 = vsel %vm247_vm12, %v552_v47, %v547_v46  ;;  %v555_v50 = vsel %vm248_vm11, %v553_v48, %v546_v43  ;;  %633 = vmatprep.mubr.f32.mxu1 %v2106_v12  ;;  %2019 = vmatprep.subr.msk.mxu0 %vm300_vm4, %v2162_v1  ;;  %v557_v55 = vsel %vm250_vm10, %v546_v43, %v553_v48 }
 0x105   : > { %2015 = vmatprep.subr.msk.mxu1 %vm300_vm4, %v555_v50  ;;  %2020 = vmatpush1.msk.msra.mxu0 %vm300_vm4, %v2154_v0  ;;  %v556_v56 = vsel %vm249_vm9, %v547_v46, %v552_v47 }
 0x106   : > { %v811_v53 = vpop.permute.xlu1 %810  ;;  %2016 = vmatpush1.msk.msra.mxu1 %vm300_vm4, %v554_v49  ;;  %v809_v54 = vpop.permute.xlu0 %808  ;;  %715 = vmatprep.mubr.f32.mxu0 %v2106_v12 }
 0x107   : > { %2017 = vmatmul.mubr.msk.f32.vlgmr.msra.gmra.mxu1 %vm296_vm5, %v2014_v51  ;;  %2023 = vmatprep.subr.msk.mxu1 %vm300_vm4, %v557_v55  ;;  %v812_v60 = vsel %vm279_vm13, %v809_v54, %v811_v53  ;;  %v813_v61 = vsel %vm279_vm13, %v811_v53, %v809_v54 }
 0x108   : > { %2024 = vmatpush1.msk.msra.mxu1 %vm300_vm4, %v556_v56  ;;  %2021 = vmatmul.mubr.msk.f32.vlgmr.msra.gmra.mxu0 %vm296_vm5, %v2018_v52 }
 0x109   : > { %2031 = vmatprep.subr.msk.mxu1 %vm300_vm4, %v274_v23  ;;  %799 = vmatprep.mubr.f32.mxu1 %v2106_v12 }
 0x10a   : > { %v817_v58 = vpop.permute.xlu1 %816  ;;  %v815_v59 = vpop.permute.xlu0 %814  ;;  %899 = vmatprep.mubr.f32.mxu0 %v2106_v12 }
 0x10b   : > { %v818_v62 = vsel %vm286_vm8, %v815_v59, %v817_v58  ;;  %v819_v63 = vsel %vm286_vm8, %v817_v58, %v815_v59  ;;  %2025 = vmatmul.mubr.msk.f32.vlgmr.msra.gmra.mxu1 %vm296_vm5, %v2022_v57 }
 0x10c   : > { %v820_v1 = vsel %vm247_vm12, %v818_v62, %v813_v61  ;;  %2032 = vmatpush1.msk.msra.mxu1 %vm300_vm4, %v2218_v22  ;;  %v821_v2 = vsel %vm248_vm11, %v819_v63, %v812_v60  ;;  %983 = vmatprep.mubr.f32.mxu1 %v2106_v12  ;;  %v823_v5 = vsel %vm250_vm10, %v812_v60, %v819_v63 }
 0x10d   : > { %2027 = vmatprep.subr.msk.mxu0 %vm300_vm4, %v821_v2  ;;  %v822_v6 = vsel %vm249_vm9, %v813_v61, %v818_v62 }
 0x10e   : > { %2028 = vmatpush1.msk.msra.mxu0 %vm300_vm4, %v820_v1 }
 0x10f   : > { %2029 = vmatmul.mubr.msk.f32.vlgmr.msra.gmra.mxu0 %vm296_vm5, %v2026_v3  ;;  %2033 = vmatmul.mubr.msk.f32.vlgmr.msra.gmra.mxu1 %vm296_vm5, %v2030_v4 }
 0x110   : > { %2035 = vmatprep.subr.msk.mxu0 %vm300_vm4, %v823_v5  ;;  %1067 = vmatprep.mubr.f32.mxu0 %v2106_v12 }
 0x111   : > { %2036 = vmatpush1.msk.msra.mxu0 %vm300_vm4, %v822_v6  ;;  %1206 = vmatprep.mubr.f32.mxu1 %v2106_v12 }
 0x113   : > { %2037 = vmatmul.mubr.msk.f32.vlgmr.msra.gmra.mxu0 %vm296_vm5, %v2034_v10 }
 0x114   : > { %1286 = vmatprep.mubr.f32.mxu0 %v2106_v12 }
 0x14b   : > { %v373_v11 = vpop.f32.mrf.mxu0 }
 0x14d   : > { %v375_v13 = vpop.f32.mrf.mxu0 }
 0x1c3   : > { %v453_v14 = vpop.f32.mrf.mxu1  ;;  %v535_v15 = vpop.f32.mrf.mxu0 }
 0x1c4   : > { %v454_v16 = vadd.f32 %v453_v14, %v373_v11 }
 0x1c5   : > { %v455_v17 = vpop.f32.mrf.mxu1  ;;  %v537_v18 = vpop.f32.mrf.mxu0 }
 0x1c6   : > { %v456_v19 = vadd.f32 %v455_v17, %v375_v13  ;;  %v540_v20 = vadd.f32 %v535_v15, %v454_v16 }
 0x1c7   : > { %v635_v21 = vpop.f32.mrf.mxu1 }
 0x1c8   : > { %v541_v22 = vadd.f32 %v537_v18, %v456_v19  ;;  %v640_v23 = vadd.f32 %v635_v21, %v540_v20  ;;  %v717_v24 = vpop.f32.mrf.mxu0  ;;  %v2038_v19 = vld [vmem:[%s2522_s4 + $0xc] sm:$0xf] }
 0x1c9   : > { %v637_v25 = vpop.f32.mrf.mxu1 }
 0x1ca   : > { %v641_v26 = vadd.f32 %v637_v25, %v541_v22  ;;  %v722_v29 = vadd.f32 %v717_v24, %v640_v23  ;;  %v719_v30 = vpop.f32.mrf.mxu0 }
 0x1cb   : > { %v801_v31 = vpop.f32.mrf.mxu1 }
 0x1cc   : > { %v723_v32 = vadd.f32 %v719_v30, %v641_v26  ;;  %v806_v34 = vadd.f32 %v801_v31, %v722_v29 }
 0x1cd   : > { %v803_v33 = vpop.f32.mrf.mxu1 }
 0x1ce   : > { %v807_v37 = vadd.f32 %v803_v33, %v723_v32 }
 0x1cf   : > { %v901_v35 = vpop.f32.mrf.mxu0  ;;  %v985_v36 = vpop.f32.mrf.mxu1 }
 0x1d0   : > { %v906_v38 = vadd.f32 %v901_v35, %v806_v34 }
 0x1d1   : > { %v903_v39 = vpop.f32.mrf.mxu0  ;;  %v987_v42 = vpop.f32.mrf.mxu1 }
 0x1d2   : > { %v990_v40 = vadd.f32 %v985_v36, %v906_v38  ;;  %v907_v41 = vadd.f32 %v903_v39, %v807_v37  ;;  %v1130_v36 = vld [vmem:[%s2522_s4] sm:$0xf]  ;;  %v2045_v38 = vld [vmem:[%s2522_s4 + $0x18] sm:$0xf] }
 0x1d3   : > { %v1069_v43 = vpop.f32.mrf.mxu0 }
 0x1d4   : > { %v991_v44 = vadd.f32 %v987_v42, %v907_v41  ;;  %v1074_v45 = vadd.f32 %v1069_v43, %v990_v40 }
 0x1d5   : > { %v1071_v46 = vpop.f32.mrf.mxu0 }
 0x1d6   : > { %v1075_v47 = vadd.f32 %v1071_v46, %v991_v44  ;;  %v1076_v48 = vsel %vm300_vm4, %v1074_v45, 0.0  ;;  %v2049_v46 = vld [vmem:[%s2522_s4 + $0x4] sm:$0xf] }
 0x1d8   : > { %v1077_v49 = vsel %vm300_vm4, %v1075_v47, 0.0 }
 0x1d9   : > { %v1078_v50 = vadd.f32 %v1077_v49, %v1076_v48  ;;  %v2053_v48 = vld [vmem:[%s2522_s4 + $0x10] sm:$0xf] }
 0x1db   : > { %1079 = vadd.xlane.f32.xlu0 %v1078_v50 }
 0x264   : > { %v1080_v51 = vpop.xlane.xlu0 %1079 }
 0x265   : > { %v1081_v52 = vmul.f32 0.00390625, %v1080_v51 }
 0x267   : > { %v1082_v53 = vsub.f32 %v1074_v45, %v1081_v52  ;;  %v1083_v54 = vsub.f32 %v1075_v47, %v1081_v52  ;;  %v2057_v52 = vld [vmem:[%s2522_s4 + $0x1c] sm:$0xf] }
 0x269   : > { %v1084_v55 = vmul.f32 %v1082_v53, %v1082_v53  ;;  %v1085_v56 = vmul.f32 %v1083_v54, %v1083_v54 }
 0x26b   : > { %v1086_v57 = vsel %vm300_vm4, %v1084_v55, 0.0  ;;  %v1087_v58 = vsel %vm300_vm4, %v1085_v56, 0.0 }
 0x26c   : > { %v1088_v59 = vadd.f32 %v1087_v58, %v1086_v57 }
 0x26e   : > { %1089 = vadd.xlane.f32.xlu1 %v1088_v59 }
 0x2f7   : > { %v1090_v60 = vpop.xlane.xlu1 %1089 }
 0x2f8   : > { %v1091_v61 = vmul.f32 0.00390625, %v1090_v60 }
 0x2fa   : > { %v1092_v62 = vadd.f32 1e-05, %v1091_v61  ;;  %v2061_v61 = vld [vmem:[%s2522_s4 + $0x8] sm:$0xf] }
 0x2fc   : > { %2091 = vrsqrt.f32 %v1092_v62 }
 0x309   : > { %v2092_v63 = vpop.eup %2091 }
 0x30a   : > { %v1095_v1 = vmul.f32 %v2092_v63, %v1083_v54  ;;  %v1094_v2 = vmul.f32 %v2092_v63, %v1082_v53 }
 0x30c   : > { %v1097_v3 = vmax.f32 %v1095_v1, 0.0  ;;  %v2352_v4 = vmax.f32 %v1094_v2, 0.0  ;;  %v2069_v1 = vld [vmem:[%s2522_s4 + $0x20] sm:$0xf] }
 0x30e   : > { %1100 = vrot.lane.b32.xlu1 %v1097_v3, %s2104_s25  ;;  %1098 = vrot.lane.b32.xlu0 %v2352_v4, %s2104_s25 }
 0x312   : > { %1106 = vrot.lane.b32.xlu1 %v1097_v3, %s2103_s24  ;;  %1104 = vrot.lane.b32.xlu0 %v2352_v4, %s2103_s24 }
 0x316   : > { %1379 = vrot.lane.b32.xlu1 %v1097_v3, %s2105_s26  ;;  %1377 = vrot.lane.b32.xlu0 %v2352_v4, %s2105_s26 }
 0x380   : > { %v1101_v5 = vpop.permute.xlu1 %1100  ;;  %v1099_v6 = vpop.permute.xlu0 %1098 }
 0x381   : > { %v1102_v13 = vsel %vm261_vm1, %v1099_v6, %v1101_v5  ;;  %v1103_v14 = vsel %vm261_vm1, %v1101_v5, %v1099_v6 }
 0x384   : > { %v1107_v10 = vpop.permute.xlu1 %1106  ;;  %v1105_v11 = vpop.permute.xlu0 %1104 }
 0x385   : > { %v1108_v15 = vsel %vm268_vm0, %v1105_v11, %v1107_v10  ;;  %v1109_v16 = vsel %vm268_vm0, %v1107_v10, %v1105_v11 }
 0x386   : > { %v1111_v17 = vsel %vm244_vm3, %v1109_v16, %v1102_v13  ;;  %v1110_v18 = vsel %vm243_vm2, %v1108_v15, %v1103_v14  ;;  %v1113_v20 = vsel %vm246_vm7, %v1102_v13, %v1109_v16  ;;  %v2394_v21 = vsel %vm245_vm6, %v1103_v14, %v1108_v15 }
 0x387   : > { %1116 = vrot.lane.b32.xlu1 %v1111_v17, %s2105_s26  ;;  %2039 = vmatprep.subr.msk.mxu1 %vm300_vm4, %v1111_v17 }
 0x388   : > { %1114 = vrot.lane.b32.xlu0 %v1110_v18, %s2105_s26  ;;  %2040 = vmatpush1.msk.msra.mxu1 %vm300_vm4, %v1110_v18  ;;  %v1380_v22 = vpop.permute.xlu1 %1379  ;;  %v1378_v23 = vpop.permute.xlu0 %1377 }
 0x389   : > { %2041 = vmatmul.mubr.msk.f32.vlgmr.msra.gmra.mxu1 %vm296_vm5, %v2038_v19  ;;  %v1381_v39 = vsel %vm279_vm13, %v1378_v23, %v1380_v22  ;;  %v1382_v41 = vsel %vm279_vm13, %v1380_v22, %v1378_v23 }
 0x38a   : > { %1368 = vmatprep.mubr.f32.mxu1 %v2106_v12 }
 0x38b   : > { %1122 = vrot.lane.b32.xlu1 %v1111_v17, %s2107_s6 }
 0x38c   : > { %1120 = vrot.lane.b32.xlu0 %v1110_v18, %s2107_s6 }
 0x38f   : > { %1385 = vrot.lane.b32.xlu1 %v1097_v3, %s2107_s6 }
 0x390   : > { %1383 = vrot.lane.b32.xlu0 %v2352_v4, %s2107_s6 }
 0x393   : > { %1647 = vrot.lane.b32.xlu1 %v1113_v20, %s2105_s26 }
 0x394   : > { %1645 = vrot.lane.b32.xlu0 %v2394_v21, %s2105_s26 }
 0x397   : > { %1653 = vrot.lane.b32.xlu1 %v1113_v20, %s2107_s6 }
 0x398   : > { %1651 = vrot.lane.b32.xlu0 %v2394_v21, %s2107_s6 }
 0x3f9   : > { %v1117_v24 = vpop.permute.xlu1 %1116 }
 0x3fa   : > { %v1115_v25 = vpop.permute.xlu0 %1114 }
 0x3fb   : > { %v1118_v29 = vsel %vm279_vm13, %v1115_v25, %v1117_v24  ;;  %v1119_v8 = vsel %vm279_vm13, %v1117_v24, %v1115_v25 }
 0x3fd   : > { %v1123_v9 = vpop.permute.xlu1 %1122 }
 0x3fe   : > { %v1121_v26 = vpop.permute.xlu0 %1120 }
 0x3ff   : > { %v1124_v30 = vsel %vm286_vm8, %v1121_v26, %v1123_v9  ;;  %v1125_v31 = vsel %vm286_vm8, %v1123_v9, %v1121_v26 }
 0x400   : > { %v1126_v32 = vsel %vm247_vm12, %v1124_v30, %v1119_v8  ;;  %v1128_v33 = vsel %vm249_vm9, %v1119_v8, %v1124_v30  ;;  %v1127_v34 = vsel %vm248_vm11, %v1125_v31, %v1118_v29  ;;  %v1129_v35 = vsel %vm250_vm10, %v1118_v29, %v1125_v31 }
 0x401   : > { %2042 = vmatprep.subr.msk.mxu0 %vm300_vm4, %v1127_v34  ;;  %2046 = vmatprep.subr.msk.mxu1 %vm300_vm4, %v1129_v35  ;;  %v1386_v37 = vpop.permute.xlu1 %1385 }
 0x402   : > { %2043 = vmatpush1.msk.msra.mxu0 %vm300_vm4, %v1126_v32  ;;  %2047 = vmatpush1.msk.msra.mxu1 %vm300_vm4, %v1128_v33  ;;  %v1384_v40 = vpop.permute.xlu0 %1383 }
 0x403   : > { %v1387_v42 = vsel %vm286_vm8, %v1384_v40, %v1386_v37  ;;  %v1388_v43 = vsel %vm286_vm8, %v1386_v37, %v1384_v40  ;;  %2044 = vmatmul.mubr.msk.f32.vlgmr.msra.gmra.mxu0 %vm296_vm5, %v1130_v36  ;;  %2054 = vmatprep.subr.msk.mxu1 %vm300_vm4, %v1097_v3 }
 0x404   : > { %v1389_v44 = vsel %vm247_vm12, %v1387_v42, %v1382_v41  ;;  %2048 = vmatmul.mubr.msk.f32.vlgmr.msra.gmra.mxu1 %vm296_vm5, %v2045_v38  ;;  %v1390_v45 = vsel %vm248_vm11, %v1388_v43, %v1381_v39  ;;  %1468 = vmatprep.mubr.f32.mxu0 %v2106_v12  ;;  %v1392_v50 = vsel %vm250_vm10, %v1381_v39, %v1388_v43 }
 0x405   : > { %2055 = vmatpush1.msk.msra.mxu1 %vm300_vm4, %v2352_v4  ;;  %2050 = vmatprep.subr.msk.mxu0 %vm300_vm4, %v1390_v45  ;;  %v1648_v47 = vpop.permute.xlu1 %1647  ;;  %v1391_v51 = vsel %vm249_vm9, %v1382_v41, %v1387_v42 }
 0x406   : > { %2051 = vmatpush1.msk.msra.mxu0 %vm300_vm4, %v1389_v44  ;;  %v1646_v49 = vpop.permute.xlu0 %1645  ;;  %1552 = vmatprep.mubr.f32.mxu1 %v2106_v12 }
 0x407   : > { %2052 = vmatmul.mubr.msk.f32.vlgmr.msra.gmra.mxu0 %vm296_vm5, %v2049_v46  ;;  %2058 = vmatprep.subr.msk.mxu0 %vm300_vm4, %v1392_v50  ;;  %v1649_v55 = vsel %vm279_vm13, %v1646_v49, %v1648_v47  ;;  %v1650_v56 = vsel %vm279_vm13, %v1648_v47, %v1646_v49 }
 0x408   : > { %2059 = vmatpush1.msk.msra.mxu0 %vm300_vm4, %v1391_v51  ;;  %2056 = vmatmul.mubr.msk.f32.vlgmr.msra.gmra.mxu1 %vm296_vm5, %v2053_v48 }
 0x409   : > { %2066 = vmatprep.subr.msk.mxu0 %vm300_vm4, %v1113_v20  ;;  %v1654_v53 = vpop.permute.xlu1 %1653  ;;  %1636 = vmatprep.mubr.f32.mxu0 %v2106_v12 }
 0x40a   : > { %v1652_v54 = vpop.permute.xlu0 %1651  ;;  %1736 = vmatprep.mubr.f32.mxu1 %v2106_v12 }
 0x40b   : > { %v1655_v57 = vsel %vm286_vm8, %v1652_v54, %v1654_v53  ;;  %v1656_v58 = vsel %vm286_vm8, %v1654_v53, %v1652_v54  ;;  %2060 = vmatmul.mubr.msk.f32.vlgmr.msra.gmra.mxu0 %vm296_vm5, %v2057_v52 }
 0x40c   : > { %v1657_v59 = vsel %vm247_vm12, %v1655_v57, %v1650_v56  ;;  %2067 = vmatpush1.msk.msra.mxu0 %vm300_vm4, %v2394_v21  ;;  %v1658_v60 = vsel %vm248_vm11, %v1656_v58, %v1649_v55  ;;  %1820 = vmatprep.mubr.f32.mxu0 %v2106_v12  ;;  %v1660_v62 = vsel %vm250_vm10, %v1649_v55, %v1656_v58 }
 0x40d   : > { %2062 = vmatprep.subr.msk.mxu1 %vm300_vm4, %v1658_v60  ;;  %v1659_v63 = vsel %vm249_vm9, %v1650_v56, %v1655_v57 }
 0x40e   : > { %2063 = vmatpush1.msk.msra.mxu1 %vm300_vm4, %v1657_v59 }
 0x40f   : > { %2064 = vmatmul.mubr.msk.f32.vlgmr.msra.gmra.mxu1 %vm296_vm5, %v2061_v61  ;;  %2070 = vmatprep.subr.msk.mxu1 %vm300_vm4, %v1660_v62 }
 0x410   : > { %2071 = vmatpush1.msk.msra.mxu1 %vm300_vm4, %v1659_v63  ;;  %2068 = vmatmul.mubr.msk.f32.vlgmr.msra.gmra.mxu0 %vm296_vm5, %v2065_v7 }
 0x411   : > { %1904 = vmatprep.mubr.f32.mxu1 %v2106_v12 }
 0x413   : > { %2072 = vmatmul.mubr.msk.f32.vlgmr.msra.gmra.mxu1 %vm296_vm5, %v2069_v1 }
 0x449   : > { %v1208_v28 = vpop.f32.mrf.mxu1 }
 0x44b   : > { %v1210_v2 = vpop.f32.mrf.mxu1 }
 0x4c3   : > { %v1288_v27 = vpop.f32.mrf.mxu0 }
 0x4c4   : > { %v1289_v3 = vadd.f32 %v1288_v27, %v1208_v28  ;;  %v1370_v4 = vpop.f32.mrf.mxu1 }
 0x4c5   : > { %v1290_v5 = vpop.f32.mrf.mxu0 }
 0x4c6   : > { %v1291_v6 = vadd.f32 %v1290_v5, %v1210_v2  ;;  %v1375_v10 = vadd.f32 %v1370_v4, %v1289_v3  ;;  %v1372_v11 = vpop.f32.mrf.mxu1 }
 0x4c7   : > { %v1470_v13 = vpop.f32.mrf.mxu0 }
 0x4c8   : > { %v1376_v14 = vadd.f32 %v1372_v11, %v1291_v6  ;;  %v1475_v15 = vadd.f32 %v1470_v13, %v1375_v10  ;;  %v1554_v16 = vpop.f32.mrf.mxu1 }
 0x4c9   : > { %v1472_v17 = vpop.f32.mrf.mxu0 }
 0x4ca   : > { %v1476_v18 = vadd.f32 %v1472_v17, %v1376_v14  ;;  %v1559_v19 = vadd.f32 %v1554_v16, %v1475_v15  ;;  %v1556_v20 = vpop.f32.mrf.mxu1 }
 0x4cb   : > { %v1638_v12 = vpop.f32.mrf.mxu0 }
 0x4cc   : > { %v1560_v21 = vadd.f32 %v1556_v20, %v1476_v18  ;;  %v1643_v23 = vadd.f32 %v1638_v12, %v1559_v19 }
 0x4cd   : > { %v1640_v22 = vpop.f32.mrf.mxu0 }
 0x4ce   : > { %v1644_v25 = vadd.f32 %v1640_v22, %v1560_v21 }
 0x4cf   : > { %v1738_v24 = vpop.f32.mrf.mxu1 }
 0x4d0   : > { %v1743_v9 = vadd.f32 %v1738_v24, %v1643_v23  ;;  %v1822_v26 = vpop.f32.mrf.mxu0 }
 0x4d1   : > { %v1740_v29 = vpop.f32.mrf.mxu1 }
 0x4d2   : > { %v1744_v8 = vadd.f32 %v1740_v29, %v1644_v25  ;;  %v1827_v30 = vadd.f32 %v1822_v26, %v1743_v9  ;;  %v1824_v31 = vpop.f32.mrf.mxu0 }
 0x4d3   : > { %v1906_v32 = vpop.f32.mrf.mxu1 }
 0x4d4   : > { %v1828_v33 = vadd.f32 %v1824_v31, %v1744_v8  ;;  %v1911_v34 = vadd.f32 %v1906_v32, %v1827_v30 }
 0x4d5   : > { %v1908_v35 = vpop.f32.mrf.mxu1 }
 0x4d6   : > { %v1912_v36 = vadd.f32 %v1908_v35, %v1828_v33  ;;  %v1913_v37 = vsel %vm300_vm4, %v1911_v34, 0.0 }
 0x4d8   : > { %v1914_v38 = vsel %vm300_vm4, %v1912_v36, 0.0 }
 0x4d9   : > { %v1915_v39 = vadd.f32 %v1914_v38, %v1913_v37 }
 0x4db   : > { %1916 = vadd.xlane.f32.xlu0 %v1915_v39 }
 0x564   : > { %v1917_v40 = vpop.xlane.xlu0 %1916 }
 0x565   : > { %v1918_v41 = vmul.f32 0.00390625, %v1917_v40 }
 0x567   : > { %v1919_v42 = vsub.f32 %v1911_v34, %v1918_v41  ;;  %v1920_v43 = vsub.f32 %v1912_v36, %v1918_v41 }
 0x569   : > { %v1921_v44 = vmul.f32 %v1919_v42, %v1919_v42  ;;  %v1922_v45 = vmul.f32 %v1920_v43, %v1920_v43 }
 0x56b   : > { %v1923_v46 = vsel %vm300_vm4, %v1921_v44, 0.0  ;;  %v1924_v47 = vsel %vm300_vm4, %v1922_v45, 0.0 }
 0x56c   : > { %v1925_v48 = vadd.f32 %v1924_v47, %v1923_v46 }
 0x56e   : > { %1926 = vadd.xlane.f32.xlu1 %v1925_v48 }
 0x5f7   : > { %v1927_v49 = vpop.xlane.xlu1 %1926 }
 0x5f8   : > { %v1928_v50 = vmul.f32 0.00390625, %v1927_v49 }
 0x5fa   : > { %v1929_v51 = vadd.f32 1e-05, %v1928_v50 }
 0x5fc   : > { %2093 = vrsqrt.f32 %v1929_v51 }
 0x609   : > { %v2094_v52 = vpop.eup %2093 }
 0x60a   : > { %v1931_v53 = vmul.f32 %v2094_v52, %v1919_v42  ;;  %v1932_v54 = vmul.f32 %v2094_v52, %v1920_v43 }
 0x60c   : > { %v1935_v55 = vcombine.low %v1931_v53, %v1932_v54 }
 0x60e   : > { %v1937_v56 = vadd.f32 %v1935_v55, %v2154_v0 }
 0x610   : > { %1938 = vst [vmem:[%s224_s29] sm:$0xff] %v1937_v56 }
 0x611 PF: > { %s15_s18 = sadd.s32 1, %s2101_s18  }
 0x612   : > { %p12_p4 = scmp.ge.s32.totalorder %s15_s18, 4  }
 0x614   :  { %14 = sbr.rel (!%p12_p4) target bundleno = 1 (0x1), region = 86 }

</bundles_post_ra>
